<compile_context>
chip_gen: v6e
topology: v6e:2x2x1
jax: 0.10.0
libtpu: 0.0.40
codegen_flags: <defaults>
</compile_context>

<pallas_src>
import functools

import jax
import jax.numpy as jnp
from jax.experimental import pallas as pl
from jax.experimental.pallas import tpu as pltpu

NUM_CLASSES = 10
LOGIT_PAD = 128      # lane-dense padded logits width
NEG_INF = -1e30      # padding bias -> exp() underflows to 0 in the softmax sum


def _round_up(x, m):
    return ((x + m - 1) // m) * m


def mlp_kernel(x_ref, w1_ref, b1_ref, w2_ref, b2_ref, w3_ref, b3_ref,
               w4_ref, b4_ref, o_ref):
    # x tile and weights are bf16; every matmul accumulates in f32 on the MXU.
    # Elementwise math (bias add, ReLU, log_softmax) stays f32 on the VPU/EUP
    # (v5e has no native bf16 VPU/EUP path).
    h = jnp.dot(x_ref[...], w1_ref[...],
                preferred_element_type=jnp.float32) + b1_ref[...]
    h = jnp.maximum(h, 0.0)

    h = jnp.dot(h.astype(jnp.bfloat16), w2_ref[...],
                preferred_element_type=jnp.float32) + b2_ref[...]
    h = jnp.maximum(h, 0.0)

    h = jnp.dot(h.astype(jnp.bfloat16), w3_ref[...],
                preferred_element_type=jnp.float32) + b3_ref[...]
    h = jnp.maximum(h, 0.0)

    # w4/b4 are padded to 128 output lanes; padded bias lanes are -1e30 so the
    # padded logits contribute exp(-inf) = 0 to the softmax denominator.
    logits = jnp.dot(h.astype(jnp.bfloat16), w4_ref[...],
                     preferred_element_type=jnp.float32) + b4_ref[...]

    # log_softmax over the (padded) lane axis: max/sum are XLU, exp/log are EUP.
    m = jnp.max(logits, axis=-1, keepdims=True)
    z = logits - m
    lse = jnp.log(jnp.sum(jnp.exp(z), axis=-1, keepdims=True))
    o_ref[...] = (z - lse).astype(o_ref.dtype)


@functools.partial(jax.jit, static_argnames=("tile_b",))
def network_forward(x, params, tile_b=1024):
    """x: [B, 784] float32. params: dict of weights/biases. Returns [B, 10] f32."""
    B = x.shape[0]
    # bf16 sublane packing wants TB % 16 == 0; TB <= 1024 keeps the
    # double-buffered (TB, 784) bf16 x-tiles + (TB, 128) f32 output tiles well
    # below the scoped-VMEM default while filling the MXU's M dimension.
    TB = min(tile_b, _round_up(B, 16))
    B_pad = _round_up(B, TB)
    if B_pad != B:
        x = jnp.pad(x, ((0, B_pad - B), (0, 0)))

    x_bf16 = x.astype(jnp.bfloat16)
    w1 = params["w1"].astype(jnp.bfloat16)
    w2 = params["w2"].astype(jnp.bfloat16)
    w3 = params["w3"].astype(jnp.bfloat16)
    w4 = jnp.pad(params["w4"],
                 ((0, 0), (0, LOGIT_PAD - NUM_CLASSES))).astype(jnp.bfloat16)
    b1, b2, b3 = params["b1"], params["b2"], params["b3"]
    b4 = jnp.pad(params["b4"], ((0, 0), (0, LOGIT_PAD - NUM_CLASSES)),
                 constant_values=NEG_INF)

    grid = (B_pad // TB,)

    def const(i):  # weights/biases: same VMEM-resident block every grid step
        return (0, 0)

    flops = 2 * B_pad * (784 * 64 + 64 * 64 + 64 * 64 + 64 * LOGIT_PAD)
    bytes_accessed = (
        x_bf16.size * 2
        + (w1.size + w2.size + w3.size + w4.size) * 2
        + (b1.size + b2.size + b3.size + b4.size) * 4
        + B_pad * LOGIT_PAD * 4)

    out = pl.pallas_call(
        mlp_kernel,
        out_shape=jax.ShapeDtypeStruct((B_pad, LOGIT_PAD), jnp.float32),
        grid=grid,
        in_specs=[
            pl.BlockSpec((TB, 784), lambda i: (i, 0)),        # x tile
            pl.BlockSpec((784, 64), const),                   # w1
            pl.BlockSpec((1, 64), const),                     # b1
            pl.BlockSpec((64, 64), const),                    # w2
            pl.BlockSpec((1, 64), const),                     # b2
            pl.BlockSpec((64, 64), const),                    # w3
            pl.BlockSpec((1, 64), const),                     # b3
            pl.BlockSpec((64, LOGIT_PAD), const),             # w4 (padded)
            pl.BlockSpec((1, LOGIT_PAD), const),              # b4 (padded)
        ],
        out_specs=pl.BlockSpec((TB, LOGIT_PAD), lambda i: (i, 0)),
        compiler_params=pltpu.CompilerParams(
            dimension_semantics=("parallel",)),
        cost_estimate=pl.CostEstimate(
            flops=flops,
            transcendentals=B_pad * (LOGIT_PAD + 1),
            bytes_accessed=bytes_accessed),
    )(x_bf16, w1, b1, w2, b2, w3, b3, w4, b4)

    return out[:B, :NUM_CLASSES]


def init_params(key):
    """Deterministic init mimicking PyTorch nn.Linear default (uniform ±1/sqrt(fan_in))."""
    sizes = [(784, 64), (64, 64), (64, 64), (64, 10)]
    params = {}
    keys = jax.random.split(key, 2 * len(sizes))
    for idx, (fan_in, fan_out) in enumerate(sizes):
        bound = 1.0 / (fan_in ** 0.5)
        w = jax.random.uniform(keys[2 * idx], (fan_in, fan_out),
                               minval=-bound, maxval=bound, dtype=jnp.float32)
        b = jax.random.uniform(keys[2 * idx + 1], (1, fan_out),
                               minval=-bound, maxval=bound, dtype=jnp.float32)
        params[f"w{idx + 1}"] = w
        params[f"b{idx + 1}"] = b
    return params


def reference_forward(x, params):
    h = jnp.maximum(x @ params["w1"] + params["b1"], 0.0)
    h = jnp.maximum(h @ params["w2"] + params["b2"], 0.0)
    h = jnp.maximum(h @ params["w3"] + params["b3"], 0.0)
    logits = h @ params["w4"] + params["b4"]
    return jax.nn.log_softmax(logits, axis=1)


if __name__ == "__main__":
    key = jax.random.PRNGKey(0)
    pkey, xkey = jax.random.split(key)
    params = init_params(pkey)
    x = jax.random.normal(xkey, (8, 784), dtype=jnp.float32)  # batch=8, 784 features

    out = network_forward(x, params)
    jax.block_until_ready(out)

    ref = reference_forward(x, params)
    assert out.shape == (8, 10)
    # bf16 matmul operands (f32 accumulate) -> looser tolerance vs f32 reference
    assert jnp.allclose(out, ref, atol=3e-2, rtol=3e-2), \
        float(jnp.max(jnp.abs(out - ref)))

    print("KERNEL_OK")
</pallas_src>

<mosaic_0001>
module attributes {stable_mosaic.version = 11 : i64} {
  func.func @mlp_kernel(%arg0: i32, %arg1: memref<16x784xbf16, #tpu.memory_space<vmem>>, %arg2: memref<784x64xbf16, #tpu.memory_space<vmem>>, %arg3: memref<1x64xf32, #tpu.memory_space<vmem>>, %arg4: memref<64x64xbf16, #tpu.memory_space<vmem>>, %arg5: memref<1x64xf32, #tpu.memory_space<vmem>>, %arg6: memref<64x64xbf16, #tpu.memory_space<vmem>>, %arg7: memref<1x64xf32, #tpu.memory_space<vmem>>, %arg8: memref<64x128xbf16, #tpu.memory_space<vmem>>, %arg9: memref<1x128xf32, #tpu.memory_space<vmem>>, %arg10: memref<16x128xf32, #tpu.memory_space<vmem>>) attributes {dimension_semantics = [#tpu.dimension_semantics<parallel>], iteration_bounds = array<i64: 1>, scalar_prefetch = 0 : i64, scratch_operands = 0 : i64, tpu.core_type = #tpu.core_type<tc>, window_params = [{transform_indices = @transform_0, window_bounds = array<i64: 16, 784>}, {pipeline_mode = #tpu.pipeline_mode<synchronous>, transform_indices = @transform_1, window_bounds = array<i64: 784, 64>}, {pipeline_mode = #tpu.pipeline_mode<synchronous>, transform_indices = @transform_2, window_bounds = array<i64: 1, 64>}, {pipeline_mode = #tpu.pipeline_mode<synchronous>, transform_indices = @transform_3, window_bounds = array<i64: 64, 64>}, {pipeline_mode = #tpu.pipeline_mode<synchronous>, transform_indices = @transform_4, window_bounds = array<i64: 1, 64>}, {pipeline_mode = #tpu.pipeline_mode<synchronous>, transform_indices = @transform_5, window_bounds = array<i64: 64, 64>}, {pipeline_mode = #tpu.pipeline_mode<synchronous>, transform_indices = @transform_6, window_bounds = array<i64: 1, 64>}, {pipeline_mode = #tpu.pipeline_mode<synchronous>, transform_indices = @transform_7, window_bounds = array<i64: 64, 128>}, {pipeline_mode = #tpu.pipeline_mode<synchronous>, transform_indices = @transform_8, window_bounds = array<i64: 1, 128>}, {transform_indices = @transform_9, window_bounds = array<i64: 16, 128>}]} {
    %c0 = arith.constant 0 : index
    %c0_0 = arith.constant 0 : index
    %0 = vector.load %arg1[%c0, %c0_0] : memref<16x784xbf16, #tpu.memory_space<vmem>>, vector<16x784xbf16>
    %c0_1 = arith.constant 0 : index
    %c0_2 = arith.constant 0 : index
    %1 = vector.load %arg2[%c0_1, %c0_2] : memref<784x64xbf16, #tpu.memory_space<vmem>>, vector<784x64xbf16>
    %cst = arith.constant dense<0.000000e+00> : vector<16x64xf32>
    %2 = tpu.matmul %0, %1, %cst {dimension_numbers = #tpu.dot_dimension_numbers<[1], [0], [0], [1], [0, 0, 1, 1], [], []>} : vector<16x784xbf16>, vector<784x64xbf16>, vector<16x64xf32> -> vector<16x64xf32>
    %c0_3 = arith.constant 0 : index
    %c0_4 = arith.constant 0 : index
    %3 = vector.load %arg3[%c0_3, %c0_4] : memref<1x64xf32, #tpu.memory_space<vmem>>, vector<1x64xf32>
    %4 = vector.broadcast %3 : vector<1x64xf32> to vector<16x64xf32>
    %5 = arith.addf %2, %4 : vector<16x64xf32>
    %cst_5 = arith.constant 0.000000e+00 : f32
    %6 = vector.broadcast %cst_5 : f32 to vector<16x64xf32>
    %7 = arith.maximumf %5, %6 : vector<16x64xf32>
    %8 = arith.truncf %7 : vector<16x64xf32> to vector<16x64xbf16>
    %c0_6 = arith.constant 0 : index
    %c0_7 = arith.constant 0 : index
    %9 = vector.load %arg4[%c0_6, %c0_7] : memref<64x64xbf16, #tpu.memory_space<vmem>>, vector<64x64xbf16>
    %cst_8 = arith.constant dense<0.000000e+00> : vector<16x64xf32>
    %10 = tpu.matmul %8, %9, %cst_8 {dimension_numbers = #tpu.dot_dimension_numbers<[1], [0], [0], [1], [0, 0, 1, 1], [], []>} : vector<16x64xbf16>, vector<64x64xbf16>, vector<16x64xf32> -> vector<16x64xf32>
    %c0_9 = arith.constant 0 : index
    %c0_10 = arith.constant 0 : index
    %11 = vector.load %arg5[%c0_9, %c0_10] : memref<1x64xf32, #tpu.memory_space<vmem>>, vector<1x64xf32>
    %12 = vector.broadcast %11 : vector<1x64xf32> to vector<16x64xf32>
    %13 = arith.addf %10, %12 : vector<16x64xf32>
    %cst_11 = arith.constant 0.000000e+00 : f32
    %14 = vector.broadcast %cst_11 : f32 to vector<16x64xf32>
    %15 = arith.maximumf %13, %14 : vector<16x64xf32>
    %16 = arith.truncf %15 : vector<16x64xf32> to vector<16x64xbf16>
    %c0_12 = arith.constant 0 : index
    %c0_13 = arith.constant 0 : index
    %17 = vector.load %arg6[%c0_12, %c0_13] : memref<64x64xbf16, #tpu.memory_space<vmem>>, vector<64x64xbf16>
    %cst_14 = arith.constant dense<0.000000e+00> : vector<16x64xf32>
    %18 = tpu.matmul %16, %17, %cst_14 {dimension_numbers = #tpu.dot_dimension_numbers<[1], [0], [0], [1], [0, 0, 1, 1], [], []>} : vector<16x64xbf16>, vector<64x64xbf16>, vector<16x64xf32> -> vector<16x64xf32>
    %c0_15 = arith.constant 0 : index
    %c0_16 = arith.constant 0 : index
    %19 = vector.load %arg7[%c0_15, %c0_16] : memref<1x64xf32, #tpu.memory_space<vmem>>, vector<1x64xf32>
    %20 = vector.broadcast %19 : vector<1x64xf32> to vector<16x64xf32>
    %21 = arith.addf %18, %20 : vector<16x64xf32>
    %cst_17 = arith.constant 0.000000e+00 : f32
    %22 = vector.broadcast %cst_17 : f32 to vector<16x64xf32>
    %23 = arith.maximumf %21, %22 : vector<16x64xf32>
    %24 = arith.truncf %23 : vector<16x64xf32> to vector<16x64xbf16>
    %c0_18 = arith.constant 0 : index
    %c0_19 = arith.constant 0 : index
    %25 = vector.load %arg8[%c0_18, %c0_19] : memref<64x128xbf16, #tpu.memory_space<vmem>>, vector<64x128xbf16>
    %cst_20 = arith.constant dense<0.000000e+00> : vector<16x128xf32>
    %26 = tpu.matmul %24, %25, %cst_20 {dimension_numbers = #tpu.dot_dimension_numbers<[1], [0], [0], [1], [0, 0, 1, 1], [], []>} : vector<16x64xbf16>, vector<64x128xbf16>, vector<16x128xf32> -> vector<16x128xf32>
    %c0_21 = arith.constant 0 : index
    %c0_22 = arith.constant 0 : index
    %27 = vector.load %arg9[%c0_21, %c0_22] : memref<1x128xf32, #tpu.memory_space<vmem>>, vector<1x128xf32>
    %28 = vector.broadcast %27 : vector<1x128xf32> to vector<16x128xf32>
    %29 = arith.addf %26, %28 : vector<16x128xf32>
    %cst_23 = arith.constant dense<0xFF800000> : vector<16xf32>
    %30 = vector.multi_reduction <maximumf>, %29, %cst_23 [1] : vector<16x128xf32> to vector<16xf32>
    %31 = vector.shape_cast %30 : vector<16xf32> to vector<16x1xf32>
    %32 = vector.broadcast %31 : vector<16x1xf32> to vector<16x128xf32>
    %33 = arith.subf %29, %32 : vector<16x128xf32>
    %34 = math.exp %33 : vector<16x128xf32>
    %cst_24 = arith.constant dense<0.000000e+00> : vector<16xf32>
    %35 = vector.multi_reduction <add>, %34, %cst_24 [1] : vector<16x128xf32> to vector<16xf32>
    %36 = vector.shape_cast %35 : vector<16xf32> to vector<16x1xf32>
    %37 = math.log %36 : vector<16x1xf32>
    %38 = vector.broadcast %37 : vector<16x1xf32> to vector<16x128xf32>
    %39 = arith.subf %33, %38 : vector<16x128xf32>
    %c0_25 = arith.constant 0 : index
    %c0_26 = arith.constant 0 : index
    %40 = vector.load %arg10[%c0_25, %c0_26] : memref<16x128xf32, #tpu.memory_space<vmem>>, vector<16x128xf32>
    tpu.vector_store %arg10[%c0_25, %c0_26], %39 {strides = array<i32>} : memref<16x128xf32, #tpu.memory_space<vmem>>, vector<16x128xf32>,
    return
  }
  func.func @transform_0(%arg0: i32) -> (i32, i32) {
    %c0_i32 = arith.constant 0 : i32
    %c0_i32_0 = arith.constant 0 : i32
    return %arg0, %c0_i32 : i32, i32
  }
  func.func @transform_1(%arg0: i32) -> (i32, i32) {
    %c0_i32 = arith.constant 0 : i32
    %c0_i32_0 = arith.constant 0 : i32
    %c0_i32_1 = arith.constant 0 : i32
    return %c0_i32, %c0_i32_0 : i32, i32
  }
  func.func @transform_2(%arg0: i32) -> (i32, i32) {
    %c0_i32 = arith.constant 0 : i32
    %c0_i32_0 = arith.constant 0 : i32
    %c0_i32_1 = arith.constant 0 : i32
    return %c0_i32, %c0_i32_0 : i32, i32
  }
  func.func @transform_3(%arg0: i32) -> (i32, i32) {
    %c0_i32 = arith.constant 0 : i32
    %c0_i32_0 = arith.constant 0 : i32
    %c0_i32_1 = arith.constant 0 : i32
    return %c0_i32, %c0_i32_0 : i32, i32
  }
  func.func @transform_4(%arg0: i32) -> (i32, i32) {
    %c0_i32 = arith.constant 0 : i32
    %c0_i32_0 = arith.constant 0 : i32
    %c0_i32_1 = arith.constant 0 : i32
    return %c0_i32, %c0_i32_0 : i32, i32
  }
  func.func @transform_5(%arg0: i32) -> (i32, i32) {
    %c0_i32 = arith.constant 0 : i32
    %c0_i32_0 = arith.constant 0 : i32
    %c0_i32_1 = arith.constant 0 : i32
    return %c0_i32, %c0_i32_0 : i32, i32
  }
  func.func @transform_6(%arg0: i32) -> (i32, i32) {
    %c0_i32 = arith.constant 0 : i32
    %c0_i32_0 = arith.constant 0 : i32
    %c0_i32_1 = arith.constant 0 : i32
    return %c0_i32, %c0_i32_0 : i32, i32
  }
  func.func @transform_7(%arg0: i32) -> (i32, i32) {
    %c0_i32 = arith.constant 0 : i32
    %c0_i32_0 = arith.constant 0 : i32
    %c0_i32_1 = arith.constant 0 : i32
    return %c0_i32, %c0_i32_0 : i32, i32
  }
  func.func @transform_8(%arg0: i32) -> (i32, i32) {
    %c0_i32 = arith.constant 0 : i32
    %c0_i32_0 = arith.constant 0 : i32
    %c0_i32_1 = arith.constant 0 : i32
    return %c0_i32, %c0_i32_0 : i32, i32
  }
  func.func @transform_9(%arg0: i32) -> (i32, i32) {
    %c0_i32 = arith.constant 0 : i32
    %c0_i32_0 = arith.constant 0 : i32
    return %arg0, %c0_i32 : i32, i32
  }
}

</mosaic_0001>

<bundles_post_ra>
// kernel: network_forward.1
= control target key start
LH: loop header
LB: loop body
LE: loop exit
PB: predicated region body
PF: predicated region fallthrough
CT: control target
= control target key end

     0   :  { %v1210_v38 = vmov 0.0   ;;  %vm1211_vm0 = vmmov 0   ;;  %vm475_vm1 = vcmask 130048   ;;  %vm685_vm2 = vcmask 523264   ;;  %s1508_s1 = inlined_call_operand.vmem [shape: bf16[784,64], index: 1, kind: input, shape index: {}]   ;;  %s1509_s0 = inlined_call_operand.vmem [shape: bf16[16,784], index: 0, kind: input, shape index: {}]   ;;  %s1510_s3 = inlined_call_operand.vmem [shape: bf16[64,64], index: 3, kind: input, shape index: {}]   ;;  %s1511_s5 = inlined_call_operand.vmem [shape: bf16[64,64], index: 5, kind: input, shape index: {}]   ;;  %s1512_s2 = inlined_call_operand.vmem [shape: f32[1,64], index: 2, kind: input, shape index: {}]   ;;  %s1513_s7 = inlined_call_operand.vmem [shape: bf16[64,128], index: 7, kind: input, shape index: {}]   ;;  %s1514_s4 = inlined_call_operand.vmem [shape: f32[1,64], index: 4, kind: input, shape index: {}]   ;;  %s1515_s6 = inlined_call_operand.vmem [shape: f32[1,64], index: 6, kind: input, shape index: {}]   ;;  %s1516_s8 = inlined_call_operand.vmem [shape: f32[1,128], index: 8, kind: input, shape index: {}]   ;;  %s1517_s9 = inlined_call_operand.vmem [shape: f32[16,128], index: 9, kind: output, shape index: {}]  }
   0x1   :  { %v1131_v0 = vld [vmem:[%s1508_s1 + $0x78] sm:$0xff]   ;;  %v1135_v4 = vld [vmem:[%s1508_s1 + $0x70] sm:$0xff]   ;;  %v1139_v8 = vld [vmem:[%s1508_s1 + $0x68] sm:$0xff]  }
   0x2   :  { %v1132_v1 = vld [vmem:[%s1508_s1 + $0x38] sm:$0xff]   ;;  %1004 = vmatprep.subr.bf16.mxu0 %v1131_v0  ;;  %v1136_v5 = vld [vmem:[%s1508_s1 + $0x30] sm:$0xff]   ;;  %v1140_v9 = vld [vmem:[%s1508_s1 + $0x28] sm:$0xff]  }
   0x3   :  { %v1133_v2 = vld [vmem:[%s1508_s1 + $0xf8] sm:$0xff]   ;;  %1005 = vmatpush3.bf16.msra.mxu0 %v1132_v1  ;;  %v1137_v6 = vld [vmem:[%s1508_s1 + $0xf0] sm:$0xff]   ;;  %v1141_v10 = vld [vmem:[%s1508_s1 + $0xe8] sm:$0xff]  }
   0x4   :  { %v1134_v3 = vld [vmem:[%s1508_s1 + $0xb8] sm:$0xff]   ;;  %1026 = vmatprep.subr.bf16.mxu1 %v1133_v2  ;;  %1006 = vmatprep.subr.bf16.mxu0 %v1135_v4  ;;  %v1138_v7 = vld [vmem:[%s1508_s1 + $0xb0] sm:$0xff]   ;;  %v1142_v11 = vld [vmem:[%s1508_s1 + $0xa8] sm:$0xff]  }
   0x5   :  { %1027 = vmatpush3.bf16.msra.mxu1 %v1134_v3  ;;  %v1143_v12 = vld [vmem:[%s1508_s1 + $0x60] sm:$0xff]   ;;  %v1147_v16 = vld [vmem:[%s1508_s1 + $0x58] sm:$0xff]   ;;  %v1151_v20 = vld [vmem:[%s1508_s1 + $0x50] sm:$0xff]  }
   0x6   :  { %1028 = vmatprep.subr.bf16.mxu1 %v1137_v6  ;;  %v1144_v13 = vld [vmem:[%s1508_s1 + $0x20] sm:$0xff]   ;;  %v1148_v17 = vld [vmem:[%s1508_s1 + $0x18] sm:$0xff]   ;;  %v1152_v21 = vld [vmem:[%s1508_s1 + $0x10] sm:$0xff]  }
   0x7   :  { %1007 = vmatpush3.bf16.msra.mxu0 %v1136_v5  ;;  %v1145_v14 = vld [vmem:[%s1508_s1 + $0xe0] sm:$0xff]   ;;  %v1149_v18 = vld [vmem:[%s1508_s1 + $0xd8] sm:$0xff]   ;;  %v1153_v22 = vld [vmem:[%s1508_s1 + $0xd0] sm:$0xff]  }
   0x8   :  { %1008 = vmatprep.subr.bf16.mxu0 %v1139_v8  ;;  %v1146_v15 = vld [vmem:[%s1508_s1 + $0xa0] sm:$0xff]   ;;  %v1150_v19 = vld [vmem:[%s1508_s1 + $0x98] sm:$0xff]   ;;  %v1154_v23 = vld [vmem:[%s1508_s1 + $0x90] sm:$0xff]  }
   0x9   :  { %1029 = vmatpush3.bf16.msra.mxu1 %v1138_v7  ;;  %v1155_v24 = vld [vmem:[%s1508_s1 + $0x48] sm:$0xff]   ;;  %v1159_v28 = vld [vmem:[%s1508_s1 + $0x40] sm:$0xff]   ;;  %v1166_v34 = vld [vmem:[%s1508_s1 + $0x178] sm:$0xff]  }
   0xa   :  { %1030 = vmatprep.subr.bf16.mxu1 %v1141_v10  ;;  %v1156_v25 = vld [vmem:[%s1508_s1 + $0x8] sm:$0xff]   ;;  %v1160_v29 = vld [vmem:[%s1508_s1] sm:$0xff]   ;;  %v1170_v37 = vld [vmem:[%s1508_s1 + $0x138] sm:$0xff]  }
   0xb   :  { %1009 = vmatpush3.bf16.msra.mxu0 %v1140_v9  ;;  %v1157_v26 = vld [vmem:[%s1508_s1 + $0xc8] sm:$0xff]   ;;  %v1161_v30 = vld [vmem:[%s1508_s1 + $0xc0] sm:$0xff]   ;;  %v1171_v39 = vld [vmem:[%s1508_s1 + $0x170] sm:$0xff]  }
   0xc   :  { %1010 = vmatprep.subr.bf16.mxu0 %v1143_v12  ;;  %v1158_v27 = vld [vmem:[%s1508_s1 + $0x88] sm:$0xff]   ;;  %v1162_v31 = vld [vmem:[%s1509_s0] ss:$28 sps:$4 sm:$0xff]   ;;  %v1172_v40 = vld [vmem:[%s1508_s1 + $0x130] sm:$0xff]  }
   0xd   :  { %1031 = vmatpush3.bf16.msra.mxu1 %v1142_v11  ;;  %v1164_v32 = vld [vmem:[%s1509_s0 + $0x4] ss:$28 sps:$4 sm:$0xff]   ;;  %v1169_v36 = vld [vmem:[%s1509_s0 + $0xc] ss:$28 sps:$4 sm:$0xff]   ;;  %v1177_v45 = vld [vmem:[%s1508_s1 + $0x158] sm:$0xff]  }
   0xe   :  { %1032 = vmatprep.subr.bf16.mxu1 %v1145_v14  ;;  %v1165_v33 = vld [vmem:[%s1508_s1 + $0x80] sm:$0xff]   ;;  %511 = vmatprep.mubr.bf16.mxu0 %v1164_v32  ;;  %v1173_v41 = vld [vmem:[%s1508_s1 + $0x168] sm:$0xff]   ;;  %v1178_v46 = vld [vmem:[%s1508_s1 + $0x118] sm:$0xff]  }
   0xf   :  { %1011 = vmatpush3.bf16.msra.mxu0 %v1144_v13  ;;  %v1167_v35 = vld [vmem:[%s1509_s0 + $0x8] ss:$28 sps:$4 sm:$0xff]   ;;  %552 = vmatprep.mubr.bf16.mxu1 %v1169_v36  ;;  %v1179_v47 = vld [vmem:[%s1508_s1 + $0x150] sm:$0xff]   ;;  %v1190_v57 = vld [vmem:[%s1510_s3 + $0x18] sm:$0xff]  }
  0x10   :  { %1012 = vmatprep.subr.bf16.mxu0 %v1147_v16  ;;  %v1174_v42 = vld [vmem:[%s1508_s1 + $0x128] sm:$0xff]   ;;  %v1175_v43 = vld [vmem:[%s1508_s1 + $0x160] sm:$0xff]   ;;  %v1188_v49 = vld [vmem:[%s1509_s0 + $0x14] ss:$28 sps:$4 sm:$0xff]  }
  0x11   :  { %1033 = vmatpush3.bf16.msra.mxu1 %v1146_v15  ;;  %v1176_v44 = vld [vmem:[%s1508_s1 + $0x120] sm:$0xff]   ;;  %v1189_v50 = vld [vmem:[%s1509_s0 + $0x18] ss:$28 sps:$4 sm:$0xff]   ;;  %v1181_v52 = vld [vmem:[%s1508_s1 + $0x148] sm:$0xff]  }
  0x12   :  { %1034 = vmatprep.subr.bf16.mxu1 %v1149_v18  ;;  %v1185_v48 = vld [vmem:[%s1508_s1 + $0x180] sm:$0xff]   ;;  %v1180_v51 = vld [vmem:[%s1508_s1 + $0x110] sm:$0xff]   ;;  %v1182_v53 = vld [vmem:[%s1508_s1 + $0x108] sm:$0xff]  }
  0x13   :  { %1013 = vmatpush3.bf16.msra.mxu0 %v1148_v17  ;;  %v1183_v54 = vld [vmem:[%s1508_s1 + $0x140] sm:$0xff]   ;;  %v1186_v56 = vld [vmem:[%s1509_s0 + $0x10] ss:$28 sps:$4 sm:$0xff]  }
  0x14   :  { %1014 = vmatprep.subr.bf16.mxu0 %v1151_v20  ;;  %v1184_v55 = vld [vmem:[%s1508_s1 + $0x100] sm:$0xff]   ;;  %v1191_v58 = vld [vmem:[%s1510_s3 + $0x10] sm:$0xff]   ;;  %v1192_v59 = vld [vmem:[%s1510_s3 + $0x8] sm:$0xff]  }
  0x15   :  { %1035 = vmatpush3.bf16.msra.mxu1 %v1150_v19  ;;  %v1193_v60 = vld [vmem:[%s1510_s3] sm:$0xff]   ;;  %v1195_v32 = vld [vmem:[%s1511_s5 + $0x10] sm:$0xff]  }
  0x16   :  { %1036 = vmatprep.subr.bf16.mxu1 %v1153_v22  ;;  %v928_v9 = vld [vmem:[%s1512_s2] ss:$0 sm:$0xff] }
  0x17   :  { %1015 = vmatpush3.bf16.msra.mxu0 %v1152_v21  ;;  %v986_v36 = vld [vmem:[%s1514_s4] ss:$0 sm:$0xff] }
  0x18   :  { %1016 = vmatprep.subr.bf16.mxu0 %v1155_v24 }
  0x19   :  { %1037 = vmatpush3.bf16.msra.mxu1 %v1154_v23 }
  0x1a   :  { %1038 = vmatprep.subr.bf16.mxu1 %v1157_v26 }
  0x1b   :  { %1017 = vmatpush3.bf16.msra.mxu0 %v1156_v25 }
  0x1c   :  { %1018 = vmatprep.subr.bf16.mxu0 %v1159_v28 }
  0x1d   :  { %1039 = vmatpush3.bf16.msra.mxu1 %v1158_v27 }
  0x1e   :  { %1040 = vmatprep.subr.bf16.mxu1 %v1161_v30  ;;  %v1194_v30 = vld [vmem:[%s1511_s5 + $0x18] sm:$0xff]  }
  0x1f   :  { %1019 = vmatpush3.bf16.msra.mxu0 %v1160_v29 }
  0x20   :  { %1048 = vmatprep.subr.bf16.mxu0 %v1166_v34  ;;  %v1197_v34 = vld [vmem:[%s1511_s5] sm:$0xff]  }
  0x21   :  { %1041 = vmatpush3.bf16.msra.mxu1 %v1165_v33  ;;  %v1196_v33 = vld [vmem:[%s1511_s5 + $0x8] sm:$0xff]  }
  0x22   :  { %512 = vmatmul.mubr.bf16.vlgmr.msra.gmra.mxu0 %v1162_v31  ;;  %1087 = vmatprep.subr.bf16.mxu1 %v1210_v38 }
  0x23   :  { %1049 = vmatpush3.bf16.msra.mxu0 %v1170_v37  ;;  %593 = vmatprep.mubr.bf16.mxu0 %v1188_v49  ;;  %v1201_v49 = vld [vmem:[%s1513_s7] sm:$0xff]  }
  0x24   :  { %553 = vmatmul.mubr.bf16.vlgmr.msra.gmra.mxu1 %v1167_v35  ;;  %1050 = vmatprep.subr.bf16.mxu0 %v1171_v39  ;;  %v1198_v35 = vld [vmem:[%s1513_s7 + $0x18] sm:$0xff]  }
  0x25   :  { %1089 = vmatprep.mubr.msk.bf16.mxu1 %vm1211_vm0, %v1210_v38  ;;  %1088 = vmatpush3.bf16.msra.mxu1 %v1185_v48  ;;  %v1200_v48 = vld [vmem:[%s1513_s7 + $0x8] sm:$0xff]  }
  0x26   :  { %1093 = vmatprep.subr.bf16.mxu1 %v1210_v38 }
  0x27   :  { %1051 = vmatpush3.bf16.msra.mxu0 %v1172_v40 }
  0x28   :  { %1052 = vmatprep.subr.bf16.mxu0 %v1173_v41 }
  0x2b   :  { %1053 = vmatpush3.bf16.msra.mxu0 %v1174_v42 }
  0x2c   :  { %1054 = vmatprep.subr.bf16.mxu0 %v1175_v43  ;;  %1090 = vmatmul.mubr.msk.bf16.vlgmr.msra.gmra.mxu1 %vm475_vm1, %v1189_v50  ;;  %v992_v50 = vld [vmem:[%s1515_s6] ss:$0 sm:$0xff] }
  0x2d   :  { %1101 = vmatprep.mubr.msk.bf16.mxu1 %vm1211_vm0, %v1210_v38  ;;  %1094 = vmatpush3.bf16.msra.mxu1 %v1190_v57 }
  0x2e   :  { %1095 = vmatprep.subr.bf16.mxu1 %v1210_v38 }
  0x2f   :  { %1055 = vmatpush3.bf16.msra.mxu0 %v1176_v44 }
  0x30   :  { %1056 = vmatprep.subr.bf16.mxu0 %v1177_v45 }
  0x31   :  { %1096 = vmatpush3.bf16.msra.mxu1 %v1191_v58 }
  0x32   :  { %1097 = vmatprep.subr.bf16.mxu1 %v1210_v38 }
  0x33   :  { %1057 = vmatpush3.bf16.msra.mxu0 %v1178_v46 }
  0x34   :  { %1058 = vmatprep.subr.bf16.mxu0 %v1179_v47  ;;  %v1199_v47 = vld [vmem:[%s1513_s7 + $0x10] sm:$0xff]  }
  0x35   :  { %1098 = vmatpush3.bf16.msra.mxu1 %v1192_v59 }
  0x36   :  { %1099 = vmatprep.subr.bf16.mxu1 %v1210_v38 }
  0x37   :  { %1059 = vmatpush3.bf16.msra.mxu0 %v1180_v51 }
  0x38   :  { %1060 = vmatprep.subr.bf16.mxu0 %v1181_v52 }
  0x39   :  { %1100 = vmatpush3.bf16.msra.mxu1 %v1193_v60 }
  0x3a   :  { %1105 = vmatprep.subr.bf16.mxu1 %v1210_v38 }
  0x3b   :  { %1061 = vmatpush3.bf16.msra.mxu0 %v1182_v53 }
  0x3c   :  { %1062 = vmatprep.subr.bf16.mxu0 %v1183_v54 }
  0x3f   :  { %1063 = vmatpush3.bf16.msra.mxu0 %v1184_v55 }
  0x40   :  { %1117 = vmatprep.subr.bf16.mxu0 %v1210_v38 }
  0x42   :  { %594 = vmatmul.mubr.bf16.vlgmr.msra.gmra.mxu0 %v1186_v56 }
  0x43   :  { %1125 = vmatprep.mubr.msk.bf16.mxu0 %vm1211_vm0, %v1210_v38  ;;  %1118 = vmatpush3.bf16.msra.mxu0 %v1198_v35 }
  0x44   :  { %1119 = vmatprep.subr.bf16.mxu0 %v1210_v38 }
  0x47   :  { %1120 = vmatpush3.bf16.msra.mxu0 %v1199_v47 }
  0x48   :  { %1121 = vmatprep.subr.bf16.mxu0 %v1210_v38 }
  0x4b   :  { %1122 = vmatpush3.bf16.msra.mxu0 %v1200_v48 }
  0x4c   :  { %1123 = vmatprep.subr.bf16.mxu0 %v1210_v38 }
  0x4f   :  { %1124 = vmatpush3.bf16.msra.mxu0 %v1201_v49 }
  0xe2   :  { %v1020_v0 = vpop.f32.mrf.mxu0 }
  0xe4   :  { %v1042_v61 = vpop.f32.mrf.mxu1  ;;  %v1021_v3 = vpop.f32.mrf.mxu0 }
  0xe5   :  { %v1022_v8 = vadd.f32 %v1021_v3, %v1020_v0 }
  0xe6   :  { %v1043_v62 = vpop.f32.mrf.mxu1  ;;  %v1023_v6 = vpop.f32.mrf.mxu0 }
  0xe7   :  { %v514_v11 = vadd.f32 %v1022_v8, %v928_v9  ;;  %v1044_v12 = vadd.f32 %v1043_v62, %v1042_v61 }
  0xe8   :  { %v1045_v63 = vpop.f32.mrf.mxu1  ;;  %v1024_v10 = vpop.f32.mrf.mxu0 }
  0xe9   :  { %v1025_v13 = vadd.f32 %v1024_v10, %v1023_v6  ;;  %v555_v16 = vadd.f32 %v1044_v12, %v514_v11 }
  0xea   :  { %v1046_v1 = vpop.f32.mrf.mxu1 }
  0xeb   :  { %v517_v17 = vadd.f32 %v1025_v13, %v928_v9  ;;  %v1047_v18 = vadd.f32 %v1046_v1, %v1045_v63 }
  0xec   :  { %v636_v2 = vpop.f32.mrf.mxu1 }
  0xed   :  { %v558_v23 = vadd.f32 %v1047_v18, %v517_v17 }
  0xee   :  { %v1091_v4 = vpop.f32.mrf.mxu1 }
  0xf0   :  { %v639_v5 = vpop.f32.mrf.mxu1 }
  0xf2   :  { %v1092_v7 = vpop.f32.mrf.mxu1 }
 0x102   :  { %v1064_v14 = vpop.f32.mrf.mxu0 }
 0x104   :  { %v1065_v15 = vpop.f32.mrf.mxu0 }
 0x105   :  { %v1066_v19 = vadd.f32 %v1065_v15, %v1064_v14 }
 0x106   :  { %v1067_v20 = vpop.f32.mrf.mxu0 }
 0x107   :  { %v596_v21 = vadd.f32 %v1066_v19, %v555_v16 }
 0x108   :  { %v1068_v22 = vpop.f32.mrf.mxu0 }
 0x109   :  { %v1069_v24 = vadd.f32 %v1068_v22, %v1067_v20  ;;  %v637_v25 = vadd.f32 %v636_v2, %v596_v21 }
 0x10b   :  { %v599_v26 = vadd.f32 %v1069_v24, %v558_v23  ;;  %v643_v28 = vmax.f32 %v637_v25, 0.0 }
 0x10d   :  { %v640_v27 = vadd.f32 %v639_v5, %v599_v26 }
 0x10f   :  { %v644_v29 = vmax.f32 %v640_v27, 0.0 }
 0x111   :  { %v645_v31 = vpack.c.bf16 %v644_v29, %v643_v28 }
 0x113   :  { %1102 = vmatmul.mubr.msk.bf16.vlgmr.msra.gmra.mxu1 %vm685_vm2, %v645_v31 }
 0x114   :  { %1106 = vmatpush3.bf16.msra.mxu1 %v1194_v30  ;;  %1113 = vmatprep.mubr.msk.bf16.mxu1 %vm1211_vm0, %v1210_v38 }
 0x115   :  { %1107 = vmatprep.subr.bf16.mxu1 %v1210_v38 }
 0x118   :  { %1108 = vmatpush3.bf16.msra.mxu1 %v1195_v32 }
 0x119   :  { %1109 = vmatprep.subr.bf16.mxu1 %v1210_v38 }
 0x11c   :  { %1110 = vmatpush3.bf16.msra.mxu1 %v1196_v33 }
 0x11d   :  { %1111 = vmatprep.subr.bf16.mxu1 %v1210_v38  ;;  %v998_v38 = vld [vmem:[%s1516_s8] ss:$0 sm:$0xff] }
 0x120   :  { %1112 = vmatpush3.bf16.msra.mxu1 %v1197_v34 }
 0x1d3   :  { %v723_v37 = vpop.f32.mrf.mxu1 }
 0x1d4   :  { %v724_v40 = vadd.f32 %v986_v36, %v723_v37 }
 0x1d5   :  { %v1103_v39 = vpop.f32.mrf.mxu1 }
 0x1d6   :  { %v730_v44 = vmax.f32 %v724_v40, 0.0 }
 0x1d7   :  { %v726_v41 = vpop.f32.mrf.mxu1 }
 0x1d8   :  { %v727_v42 = vadd.f32 %v986_v36, %v726_v41 }
 0x1d9   :  { %v1104_v43 = vpop.f32.mrf.mxu1 }
 0x1da   :  { %v731_v45 = vmax.f32 %v727_v42, 0.0 }
 0x1dc   :  { %v732_v46 = vpack.c.bf16 %v731_v45, %v730_v44 }
 0x1de   :  { %1114 = vmatmul.mubr.msk.bf16.vlgmr.msra.gmra.mxu1 %vm685_vm2, %v732_v46 }
 0x29e   :  { %v809_v51 = vpop.f32.mrf.mxu1 }
 0x29f   :  { %v810_v53 = vadd.f32 %v992_v50, %v809_v51 }
 0x2a0   :  { %v1115_v52 = vpop.f32.mrf.mxu1 }
 0x2a1   :  { %v816_v57 = vmax.f32 %v810_v53, 0.0 }
 0x2a2   :  { %v812_v54 = vpop.f32.mrf.mxu1 }
 0x2a3   :  { %v813_v55 = vadd.f32 %v992_v50, %v812_v54 }
 0x2a4   :  { %v1116_v56 = vpop.f32.mrf.mxu1 }
 0x2a5   :  { %v817_v58 = vmax.f32 %v813_v55, 0.0 }
 0x2a7   :  { %v818_v59 = vpack.c.bf16 %v817_v58, %v816_v57 }
 0x2a9   :  { %1126 = vmatmul.mubr.msk.bf16.vlgmr.msra.gmra.mxu0 %vm685_vm2, %v818_v59 }
 0x369   :  { %v895_v60 = vpop.f32.mrf.mxu0 }
 0x36a   :  { %v896_v61 = vadd.f32 %v998_v38, %v895_v60 }
 0x36b   :  { %v1127_v62 = vpop.f32.mrf.mxu0 }
 0x36c   :  { %902 = vmax.xlane.f32.xlu0 %v896_v61 }
 0x36d   :  { %v898_v63 = vpop.f32.mrf.mxu0 }
 0x36e   :  { %v899_v0 = vadd.f32 %v998_v38, %v898_v63 }
 0x36f   :  { %v1128_v1 = vpop.f32.mrf.mxu0 }
 0x370   :  { %904 = vmax.xlane.f32.xlu0 %v899_v0 }
 0x3f5   :  { %v903_v2 = vpop.xlane.xlu0 %902 }
 0x3f6   :  { %v906_v3 = vsub.f32 %v896_v61, %v903_v2 }
 0x3f8   :  { %v908_v4 = vmul.f32 1.442695, %v906_v3 }
 0x3f9   :  { %v905_v5 = vpop.xlane.xlu0 %904 }
 0x3fa   :  { %v907_v6 = vsub.f32 %v899_v0, %v905_v5  ;;  %1202 = vpow2.f32 %v908_v4 }
 0x3fc   :  { %v910_v7 = vmul.f32 1.442695, %v907_v6 }
 0x3fe   :  { %1204 = vpow2.f32 %v910_v7 }
 0x407   :  { %v1203_v8 = vpop.eup %1202 }
 0x408   :  { %912 = vadd.xlane.f32.xlu1 %v1203_v8 }
 0x40b   :  { %v1205_v9 = vpop.eup %1204 }
 0x40c   :  { %914 = vadd.xlane.f32.xlu1 %v1205_v9 }
 0x491   :  { %v913_v10 = vpop.xlane.xlu1 %912 }
 0x492   :  { %1206 = vlog2.f32 %v913_v10 }
 0x495   :  { %v915_v11 = vpop.xlane.xlu1 %914 }
 0x496   :  { %1208 = vlog2.f32 %v915_v11 }
 0x49f   :  { %v1207_v12 = vpop.eup %1206 }
 0x4a0   :  { %v917_v13 = vmul.f32 0.6931472, %v1207_v12 }
 0x4a2   :  { %v920_v14 = vsub.f32 %v906_v3, %v917_v13 }
 0x4a3   :  { %v1209_v15 = vpop.eup %1208 }
 0x4a4   :  { %922 = vst [vmem:[%s1517_s9] sm:$0xff] %v920_v14  ;;  %v919_v16 = vmul.f32 0.6931472, %v1209_v15 }
 0x4a6   :  { %v921_v17 = vsub.f32 %v907_v6, %v919_v16 }
 0x4a8   :  { %923 = vst [vmem:[%s1517_s9 + $0x8] sm:$0xff] %v921_v17 }

</bundles_post_ra>
